<compile_context>
chip_gen: v6e
topology: v6e:2x2x1
jax: 0.10.0
libtpu: 0.0.40
codegen_flags: <defaults>
</compile_context>

<pallas_src>
import functools

import jax
import jax.numpy as jnp
import numpy as np
from jax import lax
from jax.experimental import pallas as pl
from jax.experimental.pallas import tpu as pltpu


def _inverted_residual_kernel(TH, W, n_rb, use_res, mxu_dtype,
                              x_ref, w1_ref, b1_ref, wdw_ref, b2_ref,
                              w3_ref, b3_ref, lm_ref, rm_ref, o_ref):
    """One (batch, row-block) grid step.

    x_ref : (1, (H+2)*W, Cin)  zero-row-padded image, resident across the
            row-block axis (re-DMA'd only when the batch index changes).
    o_ref : (1, TH*W, oup)     this row block's output.
    Remaining refs are block-invariant weights / biases / column masks.
    """
    rb = pl.program_id(1)
    TP = TH * W            # valid output pixels in this row block
    NP = (TH + 2) * W      # tile pixels including the 1-row halo on each side

    # ---- fetch the (TH+2)-row input tile (padded-row coords) -----------------
    start = pl.multiple_of(rb * TP, 8)                 # TH*W is a multiple of 8
    xt = x_ref[0, pl.ds(start, NP), :]                 # (NP, Cin) f32

    # ---- 1x1 expand (BN1 scale pre-folded into w1) + bias + ReLU (MXU) -------
    h = jnp.dot(xt.astype(mxu_dtype), w1_ref[...],
                preferred_element_type=jnp.float32)
    h = jnp.maximum(h + b1_ref[...], 0.0)              # (NP, hidden) f32

    # Conv zero-padding semantics: the depthwise must see 0 outside the image,
    # but expand(zero row) = relu(b1) != 0.  Zero the halo rows that fall
    # outside the image, decided in GLOBAL coordinates (first / last row block).
    li = lax.broadcasted_iota(jnp.int32, (NP, 1), 0)   # local flattened index
    keep = ((li >= W) | (rb > 0)) & ((li < NP - W) | (rb < n_rb - 1))
    h = jnp.where(keep, h, 0.0)

    # ---- depthwise 3x3, pad=1, stride=1 (BN2 folded): 4 XLU rolls total ------
    # Column taps first; column-validity masks are trace-time constants.
    wdw = wdw_ref[...]                                       # (9, hidden)
    tl = pltpu.roll(h, shift=1, axis=0) * lm_ref[...]        # h[i-1], col >= 1
    tr = pltpu.roll(h, shift=NP - 1, axis=0) * rm_ref[...]   # h[i+1], col <= W-2
    # Row partials (same MAC count as the 9-tap form, pure VPU FMAs):
    q0 = tl * wdw[0] + h * wdw[1] + tr * wdw[2]              # input-row offset -1
    q1 = tl * wdw[3] + h * wdw[4] + tr * wdw[5]              # input-row offset  0
    q2 = tl * wdw[6] + h * wdw[7] + tr * wdw[8]              # input-row offset +1
    # Two row rolls; the wrapped rows land only in the halo rows, never written.
    acc = q1 + pltpu.roll(q0, shift=W, axis=0) \
             + pltpu.roll(q2, shift=NP - W, axis=0)

    # ---- keep only the central TH rows from here on --------------------------
    acc = acc[W:W + TP, :]
    acc = jnp.maximum(acc + b2_ref[...], 0.0)          # bias (BN2) + ReLU

    # ---- 1x1 project (BN3 scale pre-folded) + bias (+ residual) (MXU) --------
    out = jnp.dot(acc.astype(mxu_dtype), w3_ref[...],
                  preferred_element_type=jnp.float32)
    out = out + b3_ref[...]
    if use_res:                                        # stride==1 and inp==oup
        out = out + xt[W:W + TP, :]                    # residual stays f32
    o_ref[0] = out.astype(o_ref.dtype)


def _pick_block_rows(H, W, hidden, requested, tile_bytes_target):
    """Largest TH dividing H with TH*W sublane-aligned (or TH==H) whose
    (TH+2)*W x hidden f32 intermediate fits the per-slab byte target."""
    def ok(d):
        return H % d == 0 and ((d * W) % 8 == 0 or d == H)
    if requested is not None:
        if not ok(requested):
            raise ValueError("block_rows must divide H and keep TH*W a multiple of 8")
        return requested
    cands = [d for d in range(1, H + 1) if ok(d)]
    fitting = [d for d in cands if (d + 2) * W * hidden * 4 <= tile_bytes_target]
    return max(fitting) if fitting else min(cands)


def inverted_residual(x, params, *, block_rows=None, use_bf16_mxu=False,
                      single_buffer_consts=False, tile_bytes_target=1 << 20):
    """Fused InvertedResidual forward (stride=1, expand_ratio != 1).

    x: (N, H, W, Cin) float32 channels-last.  Returns (N, H, W, oup) float32.
    use_bf16_mxu: feed the two 1x1 convs to the MXU in bf16 (v6e/v7x); weights
    are pre-cast wrapper-side, accumulation and the residual stay f32.
    """
    (w1, s1, b1, wdw, s2, b2, w3, s3, b3) = params
    N, H, W, Cin = x.shape
    hidden = w1.shape[1]
    oup = w3.shape[1]
    use_res = (Cin == oup)                   # stride==1 path; inp==oup -> residual

    TH = _pick_block_rows(H, W, hidden, block_rows, tile_bytes_target)
    n_rb = H // TH
    TP = TH * W
    NP = (TH + 2) * W
    HPW = (H + 2) * W

    # Fold BN scales into the conv weights once (wrapper-side); pre-cast the MXU
    # operands so no per-grid-step weight cast happens inside the kernel.
    mxu_dtype = jnp.bfloat16 if use_bf16_mxu else jnp.float32
    w1f = (w1 * s1).astype(mxu_dtype)                                 # (Cin, hidden)
    wdwf = (wdw * s2.reshape(1, 1, hidden)).reshape(9, hidden).astype(jnp.float32)
    w3f = (w3 * s3).astype(mxu_dtype)                                 # (hidden, oup)
    b1f = b1.astype(jnp.float32)
    b2f = b2.astype(jnp.float32)
    b3f = b3.astype(jnp.float32)

    # One zero row above/below the image; flatten spatial dims (lane-dense slabs).
    xp = jnp.pad(x, ((0, 0), (1, 1), (0, 0), (0, 0))).reshape(N, HPW, Cin)

    # Column-validity masks for the flattened tile: trace-time constants, so the
    # kernel has no integer divide and no per-tap mask re-broadcast.
    col = np.arange(NP, dtype=np.int32) % W
    lmask = jnp.asarray((col >= 1).astype(np.float32).reshape(NP, 1))
    rmask = jnp.asarray((col <= W - 2).astype(np.float32).reshape(NP, 1))

    def const_spec(shape):
        # Block-invariant inputs.  pl.Buffered(1) drops their prefetch buffer
        # (VMEM headroom against v7x's 64 MiB); off by default.
        if single_buffer_consts:
            return pl.BlockSpec(shape, lambda n, r: (0,) * len(shape),
                                pipeline_mode=pl.Buffered(1))
        return pl.BlockSpec(shape, lambda n, r: (0,) * len(shape))

    # Rough working-set estimate -> explicit scoped-VMEM limit (v7x: 64 MiB/TC).
    consts_bytes = (w1f.size * w1f.dtype.itemsize + w3f.size * w3f.dtype.itemsize
                    + wdwf.size * 4 + (b1f.size + b2f.size + b3f.size) * 4
                    + (lmask.size + rmask.size) * 4)
    io_bytes = 2 * HPW * Cin * 4 + 2 * TP * oup * 4        # double-buffered blocks
    interm_bytes = 8 * NP * hidden * 4                      # h, taps, q0..q2, acc
    est = consts_bytes * (1 if single_buffer_consts else 2) + io_bytes + interm_bytes
    vmem_limit = int(min(48 * 2**20, max(32 * 2**20, 1.5 * est)))

    kernel = functools.partial(_inverted_residual_kernel,
                               TH, W, n_rb, use_res, mxu_dtype)

    out = pl.pallas_call(
        kernel,
        out_shape=jax.ShapeDtypeStruct((N, H * W, oup), x.dtype),
        grid_spec=pltpu.PrefetchScalarGridSpec(
            num_scalar_prefetch=0,
            grid=(N, n_rb),                     # batch x row-block
            in_specs=[
                # Full padded image per batch element; resident across row blocks.
                pl.BlockSpec((1, HPW, Cin), lambda n, r: (n, 0, 0)),
                const_spec((Cin, hidden)),      # w1  (BN1 scale folded, MXU dtype)
                const_spec((1, hidden)),        # b1
                const_spec((9, hidden)),        # depthwise taps (BN2 scale folded)
                const_spec((1, hidden)),        # b2
                const_spec((hidden, oup)),      # w3  (BN3 scale folded, MXU dtype)
                const_spec((1, oup)),           # b3
                const_spec((NP, 1)),            # left-neighbor column mask
                const_spec((NP, 1)),            # right-neighbor column mask
            ],
            out_specs=pl.BlockSpec((1, TP, oup), lambda n, r: (n, r, 0)),
        ),
        compiler_params=pltpu.CompilerParams(
            dimension_semantics=("parallel", "parallel"),   # megacore at small N
            vmem_limit_bytes=vmem_limit,
        ),
    )(xp, w1f, b1f, wdwf, b2f, w3f, b3f, lmask, rmask)
    return out.reshape(N, H, W, oup)


def fold_bn(gamma, beta, mean, var, eps=1e-5):
    scale = gamma / jnp.sqrt(var + eps)
    bias = beta - mean * scale
    return scale[None, :], bias[None, :]


def make_params(key, inp, oup, expand_ratio):
    hidden = int(round(inp * expand_ratio))
    k1, k2, k3 = jax.random.split(key, 3)
    w1 = jax.random.normal(k1, (inp, hidden), jnp.float32) * 0.1
    wdw = jax.random.normal(k2, (3, 3, hidden), jnp.float32) * 0.1
    w3 = jax.random.normal(k3, (hidden, oup), jnp.float32) * 0.1

    def bn(c, off):
        g = 1.0 + 0.05 * jnp.arange(c, dtype=jnp.float32)
        b = 0.01 * jnp.arange(c, dtype=jnp.float32) + off
        m = 0.02 * jnp.arange(c, dtype=jnp.float32)
        v = 1.0 + 0.03 * jnp.arange(c, dtype=jnp.float32)
        return fold_bn(g, b, m, v)

    s1, b1 = bn(hidden, 0.1)
    s2, b2 = bn(hidden, -0.05)
    s3, b3 = bn(oup, 0.02)
    return (w1, s1, b1, wdw, s2, b2, w3, s3, b3)


def reference(x, params):
    """Pure-JAX reference matching PyTorch eval-mode semantics (NHWC)."""
    (w1, s1, b1, wdw, s2, b2, w3, s3, b3) = params
    hidden = w1.shape[1]
    h = jnp.einsum('nhwc,cd->nhwd', x, w1) * s1[None] + b1[None]
    h = jnp.maximum(h, 0.0)
    dw = lax.conv_general_dilated(
        h, wdw.reshape(3, 3, 1, hidden),
        window_strides=(1, 1), padding=((1, 1), (1, 1)),
        dimension_numbers=('NHWC', 'HWIO', 'NHWC'),
        feature_group_count=hidden)
    dw = dw * s2[None] + b2[None]
    dw = jnp.maximum(dw, 0.0)
    out = jnp.einsum('nhwc,cd->nhwd', dw, w3) * s3[None] + b3[None]
    return x + out


if __name__ == "__main__":
    key = jax.random.PRNGKey(0)
    kx, kp = jax.random.split(key)

    N, H, W, INP, OUP, EXPAND = 2, 16, 16, 4, 4, 6   # stride=1, inp==oup -> residual
    x = jax.random.normal(kx, (N, H, W, INP), jnp.float32)
    params = make_params(kp, INP, OUP, EXPAND)
    ref = jax.block_until_ready(reference(x, params))

    # f32 MXU path, spatial tiling exercised: 4 row blocks of 4 rows + 1-row halos.
    out = jax.block_until_ready(inverted_residual(x, params, block_rows=4))
    np.testing.assert_allclose(np.asarray(out), np.asarray(ref), rtol=1e-4, atol=1e-4)

    # bf16 MXU-operand path (v6e/v7x), different tiling; loose tolerance vs f32 ref.
    out_bf16 = jax.block_until_ready(
        inverted_residual(x, params, block_rows=8, use_bf16_mxu=True))
    np.testing.assert_allclose(np.asarray(out_bf16), np.asarray(ref),
                               rtol=5e-2, atol=5e-2)

    print("KERNEL_OK")
</pallas_src>

<mosaic_0001>
module attributes {stable_mosaic.version = 11 : i64} {
  func.func @_inverted_residual_kernel(%arg0: i32, %arg1: i32, %arg2: memref<1x288x4xf32, #tpu.memory_space<vmem>>, %arg3: memref<4x24xf32, #tpu.memory_space<vmem>>, %arg4: memref<1x24xf32, #tpu.memory_space<vmem>>, %arg5: memref<9x24xf32, #tpu.memory_space<vmem>>, %arg6: memref<1x24xf32, #tpu.memory_space<vmem>>, %arg7: memref<24x4xf32, #tpu.memory_space<vmem>>, %arg8: memref<1x4xf32, #tpu.memory_space<vmem>>, %arg9: memref<96x1xf32, #tpu.memory_space<vmem>>, %arg10: memref<96x1xf32, #tpu.memory_space<vmem>>, %arg11: memref<1x64x4xf32, #tpu.memory_space<vmem>>) attributes {dimension_semantics = [#tpu.dimension_semantics<parallel>, #tpu.dimension_semantics<parallel>], iteration_bounds = array<i64: 2, 4>, scalar_prefetch = 0 : i64, scratch_operands = 0 : i64, tpu.core_type = #tpu.core_type<tc>, window_params = [{transform_indices = @transform_0, window_bounds = array<i64: 1, 288, 4>}, {pipeline_mode = #tpu.pipeline_mode<synchronous>, transform_indices = @transform_1, window_bounds = array<i64: 4, 24>}, {pipeline_mode = #tpu.pipeline_mode<synchronous>, transform_indices = @transform_2, window_bounds = array<i64: 1, 24>}, {pipeline_mode = #tpu.pipeline_mode<synchronous>, transform_indices = @transform_3, window_bounds = array<i64: 9, 24>}, {pipeline_mode = #tpu.pipeline_mode<synchronous>, transform_indices = @transform_4, window_bounds = array<i64: 1, 24>}, {pipeline_mode = #tpu.pipeline_mode<synchronous>, transform_indices = @transform_5, window_bounds = array<i64: 24, 4>}, {pipeline_mode = #tpu.pipeline_mode<synchronous>, transform_indices = @transform_6, window_bounds = array<i64: 1, 4>}, {pipeline_mode = #tpu.pipeline_mode<synchronous>, transform_indices = @transform_7, window_bounds = array<i64: 96, 1>}, {pipeline_mode = #tpu.pipeline_mode<synchronous>, transform_indices = @transform_8, window_bounds = array<i64: 96, 1>}, {transform_indices = @transform_9, window_bounds = array<i64: 1, 64, 4>}]} {
    %c64_i32 = arith.constant 64 : i32
    %0 = arith.muli %arg1, %c64_i32 : i32
    %1 = tpu.assume_multiple %0, 8 : i32
    %c0 = arith.constant 0 : index
    %2 = arith.index_cast %1 : i32 to index
    %c0_0 = arith.constant 0 : index
    %3 = vector.load %arg2[%c0, %2, %c0_0] : memref<1x288x4xf32, #tpu.memory_space<vmem>>, vector<1x96x4xf32>
    %4 = vector.shape_cast %3 : vector<1x96x4xf32> to vector<96x4xf32>
    %c0_1 = arith.constant 0 : index
    %c0_2 = arith.constant 0 : index
    %5 = vector.load %arg3[%c0_1, %c0_2] : memref<4x24xf32, #tpu.memory_space<vmem>>, vector<4x24xf32>
    %cst = arith.constant dense<0.000000e+00> : vector<96x24xf32>
    %6 = tpu.matmul %4, %5, %cst {dimension_numbers = #tpu.dot_dimension_numbers<[1], [0], [0], [1], [0, 0, 1, 1], [], []>} : vector<96x4xf32>, vector<4x24xf32>, vector<96x24xf32> -> vector<96x24xf32>
    %c0_3 = arith.constant 0 : index
    %c0_4 = arith.constant 0 : index
    %7 = vector.load %arg4[%c0_3, %c0_4] : memref<1x24xf32, #tpu.memory_space<vmem>>, vector<1x24xf32>
    %8 = vector.broadcast %7 : vector<1x24xf32> to vector<96x24xf32>
    %9 = arith.addf %6, %8 : vector<96x24xf32>
    %cst_5 = arith.constant 0.000000e+00 : f32
    %10 = vector.broadcast %cst_5 : f32 to vector<96x24xf32>
    %11 = arith.maximumf %9, %10 : vector<96x24xf32>
    %12 = tpu.iota {dimensions = array<i32: 0>} : vector<96x1xi32>
    %c16_i32 = arith.constant 16 : i32
    %13 = vector.broadcast %c16_i32 : i32 to vector<96x1xi32>
    %14 = arith.cmpi sge, %12, %13 : vector<96x1xi32>
    %c0_i32 = arith.constant 0 : i32
    %15 = arith.cmpi sgt, %arg1, %c0_i32 : i32
    %16 = vector.broadcast %15 : i1 to vector<96x1xi1>
    %17 = arith.ori %14, %16 : vector<96x1xi1>
    %c80_i32 = arith.constant 80 : i32
    %18 = vector.broadcast %c80_i32 : i32 to vector<96x1xi32>
    %19 = arith.cmpi slt, %12, %18 : vector<96x1xi32>
    %c3_i32 = arith.constant 3 : i32
    %20 = arith.cmpi slt, %arg1, %c3_i32 : i32
    %21 = vector.broadcast %20 : i1 to vector<96x1xi1>
    %22 = arith.ori %19, %21 : vector<96x1xi1>
    %23 = arith.andi %17, %22 : vector<96x1xi1>
    %cst_6 = arith.constant 0.000000e+00 : f32
    %24 = vector.shape_cast %23 : vector<96x1xi1> to vector<96x1xi1>
    %25 = vector.broadcast %24 : vector<96x1xi1> to vector<96x24xi1>
    %26 = vector.broadcast %cst_6 : f32 to vector<96x24xf32>
    %27 = arith.select %25, %11, %26 : vector<96x24xi1>, vector<96x24xf32>
    %c0_7 = arith.constant 0 : index
    %c0_8 = arith.constant 0 : index
    %28 = vector.load %arg5[%c0_7, %c0_8] : memref<9x24xf32, #tpu.memory_space<vmem>>, vector<9x24xf32>
    %c1_i32 = arith.constant 1 : i32
    %29 = tpu.dynamic_rotate %27 by %c1_i32 dim 0 : vector<96x24xf32>, i32 -> vector<96x24xf32>
    %c0_9 = arith.constant 0 : index
    %c0_10 = arith.constant 0 : index
    %30 = vector.load %arg9[%c0_9, %c0_10] : memref<96x1xf32, #tpu.memory_space<vmem>>, vector<96x1xf32>
    %31 = vector.broadcast %30 : vector<96x1xf32> to vector<96x24xf32>
    %32 = arith.mulf %29, %31 : vector<96x24xf32>
    %c95_i32 = arith.constant 95 : i32
    %33 = tpu.dynamic_rotate %27 by %c95_i32 dim 0 : vector<96x24xf32>, i32 -> vector<96x24xf32>
    %c0_11 = arith.constant 0 : index
    %c0_12 = arith.constant 0 : index
    %34 = vector.load %arg10[%c0_11, %c0_12] : memref<96x1xf32, #tpu.memory_space<vmem>>, vector<96x1xf32>
    %35 = vector.broadcast %34 : vector<96x1xf32> to vector<96x24xf32>
    %36 = arith.mulf %33, %35 : vector<96x24xf32>
    %37 = vector.extract_strided_slice %28 {offsets = [0, 0], sizes = [1, 24], strides = [1, 1]} : vector<9x24xf32> to vector<1x24xf32>
    %38 = vector.shape_cast %37 : vector<1x24xf32> to vector<24xf32>
    %39 = vector.shape_cast %38 : vector<24xf32> to vector<1x24xf32>
    %40 = vector.broadcast %39 : vector<1x24xf32> to vector<96x24xf32>
    %41 = arith.mulf %32, %40 : vector<96x24xf32>
    %42 = vector.extract_strided_slice %28 {offsets = [1, 0], sizes = [1, 24], strides = [1, 1]} : vector<9x24xf32> to vector<1x24xf32>
    %43 = vector.shape_cast %42 : vector<1x24xf32> to vector<24xf32>
    %44 = vector.shape_cast %43 : vector<24xf32> to vector<1x24xf32>
    %45 = vector.broadcast %44 : vector<1x24xf32> to vector<96x24xf32>
    %46 = arith.mulf %27, %45 : vector<96x24xf32>
    %47 = arith.addf %41, %46 : vector<96x24xf32>
    %48 = vector.extract_strided_slice %28 {offsets = [2, 0], sizes = [1, 24], strides = [1, 1]} : vector<9x24xf32> to vector<1x24xf32>
    %49 = vector.shape_cast %48 : vector<1x24xf32> to vector<24xf32>
    %50 = vector.shape_cast %49 : vector<24xf32> to vector<1x24xf32>
    %51 = vector.broadcast %50 : vector<1x24xf32> to vector<96x24xf32>
    %52 = arith.mulf %36, %51 : vector<96x24xf32>
    %53 = arith.addf %47, %52 : vector<96x24xf32>
    %54 = vector.extract_strided_slice %28 {offsets = [3, 0], sizes = [1, 24], strides = [1, 1]} : vector<9x24xf32> to vector<1x24xf32>
    %55 = vector.shape_cast %54 : vector<1x24xf32> to vector<24xf32>
    %56 = vector.shape_cast %55 : vector<24xf32> to vector<1x24xf32>
    %57 = vector.broadcast %56 : vector<1x24xf32> to vector<96x24xf32>
    %58 = arith.mulf %32, %57 : vector<96x24xf32>
    %59 = vector.extract_strided_slice %28 {offsets = [4, 0], sizes = [1, 24], strides = [1, 1]} : vector<9x24xf32> to vector<1x24xf32>
    %60 = vector.shape_cast %59 : vector<1x24xf32> to vector<24xf32>
    %61 = vector.shape_cast %60 : vector<24xf32> to vector<1x24xf32>
    %62 = vector.broadcast %61 : vector<1x24xf32> to vector<96x24xf32>
    %63 = arith.mulf %27, %62 : vector<96x24xf32>
    %64 = arith.addf %58, %63 : vector<96x24xf32>
    %65 = vector.extract_strided_slice %28 {offsets = [5, 0], sizes = [1, 24], strides = [1, 1]} : vector<9x24xf32> to vector<1x24xf32>
    %66 = vector.shape_cast %65 : vector<1x24xf32> to vector<24xf32>
    %67 = vector.shape_cast %66 : vector<24xf32> to vector<1x24xf32>
    %68 = vector.broadcast %67 : vector<1x24xf32> to vector<96x24xf32>
    %69 = arith.mulf %36, %68 : vector<96x24xf32>
    %70 = arith.addf %64, %69 : vector<96x24xf32>
    %71 = vector.extract_strided_slice %28 {offsets = [6, 0], sizes = [1, 24], strides = [1, 1]} : vector<9x24xf32> to vector<1x24xf32>
    %72 = vector.shape_cast %71 : vector<1x24xf32> to vector<24xf32>
    %73 = vector.shape_cast %72 : vector<24xf32> to vector<1x24xf32>
    %74 = vector.broadcast %73 : vector<1x24xf32> to vector<96x24xf32>
    %75 = arith.mulf %32, %74 : vector<96x24xf32>
    %76 = vector.extract_strided_slice %28 {offsets = [7, 0], sizes = [1, 24], strides = [1, 1]} : vector<9x24xf32> to vector<1x24xf32>
    %77 = vector.shape_cast %76 : vector<1x24xf32> to vector<24xf32>
    %78 = vector.shape_cast %77 : vector<24xf32> to vector<1x24xf32>
    %79 = vector.broadcast %78 : vector<1x24xf32> to vector<96x24xf32>
    %80 = arith.mulf %27, %79 : vector<96x24xf32>
    %81 = arith.addf %75, %80 : vector<96x24xf32>
    %82 = vector.extract_strided_slice %28 {offsets = [8, 0], sizes = [1, 24], strides = [1, 1]} : vector<9x24xf32> to vector<1x24xf32>
    %83 = vector.shape_cast %82 : vector<1x24xf32> to vector<24xf32>
    %84 = vector.shape_cast %83 : vector<24xf32> to vector<1x24xf32>
    %85 = vector.broadcast %84 : vector<1x24xf32> to vector<96x24xf32>
    %86 = arith.mulf %36, %85 : vector<96x24xf32>
    %87 = arith.addf %81, %86 : vector<96x24xf32>
    %c16_i32_13 = arith.constant 16 : i32
    %88 = tpu.dynamic_rotate %53 by %c16_i32_13 dim 0 : vector<96x24xf32>, i32 -> vector<96x24xf32>
    %89 = arith.addf %70, %88 : vector<96x24xf32>
    %c80_i32_14 = arith.constant 80 : i32
    %90 = tpu.dynamic_rotate %87 by %c80_i32_14 dim 0 : vector<96x24xf32>, i32 -> vector<96x24xf32>
    %91 = arith.addf %89, %90 : vector<96x24xf32>
    %92 = vector.extract_strided_slice %91 {offsets = [16, 0], sizes = [64, 24], strides = [1, 1]} : vector<96x24xf32> to vector<64x24xf32>
    %c0_15 = arith.constant 0 : index
    %c0_16 = arith.constant 0 : index
    %93 = vector.load %arg6[%c0_15, %c0_16] : memref<1x24xf32, #tpu.memory_space<vmem>>, vector<1x24xf32>
    %94 = vector.broadcast %93 : vector<1x24xf32> to vector<64x24xf32>
    %95 = arith.addf %92, %94 : vector<64x24xf32>
    %cst_17 = arith.constant 0.000000e+00 : f32
    %96 = vector.broadcast %cst_17 : f32 to vector<64x24xf32>
    %97 = arith.maximumf %95, %96 : vector<64x24xf32>
    %c0_18 = arith.constant 0 : index
    %c0_19 = arith.constant 0 : index
    %98 = vector.load %arg7[%c0_18, %c0_19] : memref<24x4xf32, #tpu.memory_space<vmem>>, vector<24x4xf32>
    %cst_20 = arith.constant dense<0.000000e+00> : vector<64x4xf32>
    %99 = tpu.matmul %97, %98, %cst_20 {dimension_numbers = #tpu.dot_dimension_numbers<[1], [0], [0], [1], [0, 0, 1, 1], [], []>} : vector<64x24xf32>, vector<24x4xf32>, vector<64x4xf32> -> vector<64x4xf32>
    %c0_21 = arith.constant 0 : index
    %c0_22 = arith.constant 0 : index
    %100 = vector.load %arg8[%c0_21, %c0_22] : memref<1x4xf32, #tpu.memory_space<vmem>>, vector<1x4xf32>
    %101 = vector.broadcast %100 : vector<1x4xf32> to vector<64x4xf32>
    %102 = arith.addf %99, %101 : vector<64x4xf32>
    %103 = vector.extract_strided_slice %4 {offsets = [16, 0], sizes = [64, 4], strides = [1, 1]} : vector<96x4xf32> to vector<64x4xf32>
    %104 = arith.addf %102, %103 : vector<64x4xf32>
    %c0_23 = arith.constant 0 : index
    %c0_24 = arith.constant 0 : index
    %c0_25 = arith.constant 0 : index
    %105 = vector.load %arg11[%c0_23, %c0_24, %c0_25] : memref<1x64x4xf32, #tpu.memory_space<vmem>>, vector<1x64x4xf32>
    %106 = vector.shape_cast %105 : vector<1x64x4xf32> to vector<64x4xf32>
    %107 = vector.shape_cast %104 : vector<64x4xf32> to vector<1x64x4xf32>
    tpu.vector_store %arg11[%c0_23, %c0_24, %c0_25], %107 {strides = array<i32>} : memref<1x64x4xf32, #tpu.memory_space<vmem>>, vector<1x64x4xf32>,
    return
  }
  func.func @transform_0(%arg0: i32, %arg1: i32) -> (i32, i32, i32) {
    %c0_i32 = arith.constant 0 : i32
    %c0_i32_0 = arith.constant 0 : i32
    %c0_i32_1 = arith.constant 0 : i32
    return %arg0, %c0_i32, %c0_i32_0 : i32, i32, i32
  }
  func.func @transform_1(%arg0: i32, %arg1: i32) -> (i32, i32) {
    %c0_i32 = arith.constant 0 : i32
    %c0_i32_0 = arith.constant 0 : i32
    %c0_i32_1 = arith.constant 0 : i32
    return %c0_i32, %c0_i32_0 : i32, i32
  }
  func.func @transform_2(%arg0: i32, %arg1: i32) -> (i32, i32) {
    %c0_i32 = arith.constant 0 : i32
    %c0_i32_0 = arith.constant 0 : i32
    %c0_i32_1 = arith.constant 0 : i32
    return %c0_i32, %c0_i32_0 : i32, i32
  }
  func.func @transform_3(%arg0: i32, %arg1: i32) -> (i32, i32) {
    %c0_i32 = arith.constant 0 : i32
    %c0_i32_0 = arith.constant 0 : i32
    %c0_i32_1 = arith.constant 0 : i32
    return %c0_i32, %c0_i32_0 : i32, i32
  }
  func.func @transform_4(%arg0: i32, %arg1: i32) -> (i32, i32) {
    %c0_i32 = arith.constant 0 : i32
    %c0_i32_0 = arith.constant 0 : i32
    %c0_i32_1 = arith.constant 0 : i32
    return %c0_i32, %c0_i32_0 : i32, i32
  }
  func.func @transform_5(%arg0: i32, %arg1: i32) -> (i32, i32) {
    %c0_i32 = arith.constant 0 : i32
    %c0_i32_0 = arith.constant 0 : i32
    %c0_i32_1 = arith.constant 0 : i32
    return %c0_i32, %c0_i32_0 : i32, i32
  }
  func.func @transform_6(%arg0: i32, %arg1: i32) -> (i32, i32) {
    %c0_i32 = arith.constant 0 : i32
    %c0_i32_0 = arith.constant 0 : i32
    %c0_i32_1 = arith.constant 0 : i32
    return %c0_i32, %c0_i32_0 : i32, i32
  }
  func.func @transform_7(%arg0: i32, %arg1: i32) -> (i32, i32) {
    %c0_i32 = arith.constant 0 : i32
    %c0_i32_0 = arith.constant 0 : i32
    %c0_i32_1 = arith.constant 0 : i32
    return %c0_i32, %c0_i32_0 : i32, i32
  }
  func.func @transform_8(%arg0: i32, %arg1: i32) -> (i32, i32) {
    %c0_i32 = arith.constant 0 : i32
    %c0_i32_0 = arith.constant 0 : i32
    %c0_i32_1 = arith.constant 0 : i32
    return %c0_i32, %c0_i32_0 : i32, i32
  }
  func.func @transform_9(%arg0: i32, %arg1: i32) -> (i32, i32, i32) {
    %c0_i32 = arith.constant 0 : i32
    %c0_i32_0 = arith.constant 0 : i32
    return %arg0, %arg1, %c0_i32 : i32, i32, i32
  }
}

</mosaic_0001>

<bundles_post_ra>
// kernel: tpu_custom_call.1
= control target key start
LH: loop header
LB: loop body
LE: loop exit
PB: predicated region body
PF: predicated region fallthrough
CT: control target
= control target key end

     0   :  { %s1564_s30 = smov 0   ;;  %s1566_s10 = smov 0   ;;  %s2251_s0 = inlined_call_operand.vmem [shape: f32[2,288,4], index: 0, kind: input, shape index: {}]   ;;  %s2252_s1 = inlined_call_operand.vmem [shape: f32[4,24], index: 1, kind: input, shape index: {}]   ;;  %s2253_s2 = inlined_call_operand.vmem [shape: f32[1,24], index: 2, kind: input, shape index: {}]   ;;  %s2254_s3 = inlined_call_operand.vmem [shape: f32[9,24], index: 3, kind: input, shape index: {}]   ;;  %s2255_s4 = inlined_call_operand.vmem [shape: f32[1,24], index: 4, kind: input, shape index: {}]   ;;  %s2256_s5 = inlined_call_operand.vmem [shape: f32[24,4], index: 5, kind: input, shape index: {}]   ;;  %s2257_s6 = inlined_call_operand.vmem [shape: f32[1,4], index: 6, kind: input, shape index: {}]   ;;  %s2258_s7 = inlined_call_operand.vmem [shape: f32[96,1], index: 7, kind: input, shape index: {}]   ;;  %s2259_s8 = inlined_call_operand.vmem [shape: f32[96,1], index: 8, kind: input, shape index: {}]   ;;  %s2260_s9 = inlined_call_operand.vmem [shape: f32[2,256,4], index: 9, kind: output, shape index: {}]  }
   0x1   :  { %s1568_s11 = smov 0   ;;  %s1570_s12 = smov 0  }
   0x2   :  { %s1572_s13 = smov 0  }
   0x3 LB: > { %s28_s14 = sadd.s32 1, %s1503_s11  ;;  %s31_s15 = sadd.s32 1, %s1507_s12  ;;  %s1511_s13 = sphi %s1572_s13, %s19_s13   ;;  %s1507_s12 = sphi %s1570_s12, %s2332_s12   ;;  %s1503_s11 = sphi %s1568_s11, %s2331_s11   ;;  %s1499_s10 = sphi %s1566_s10, %s2330_s10   ;;  %s1495_s30 = sphi %s1564_s30, %s2329_s30  }
   0x4   : > { %p29_p0 = scmp.ge.s32.totalorder %s28_s14, 4  ;;  %p1334_p1 = scmp.ge.s32.totalorder %s1511_s13, 1 }
   0x5   : > { %p301_p2 = scmp.lt.s32.totalorder %s1511_s13, 9 }
   0x6   : > { %s2334_s14 = smov (%p29_p0, %s28_s14), 0  ;;  %s2336_s15 = smov (!%p29_p0, %s31_s15), %s1507_s12 }
   0x7   : > { %p302_p3 = pnand %p1334_p1, %p301_p2  ;;  %p33_p4 = scmp.ge.s32.totalorder %s2336_s15, 2 }
   0x9   : > { %s2338_s15 = smov (%p33_p4, %s2336_s15), 0  ;;  %305 = sbr.rel (%p302_p3) target bundleno = 493 (0x1ed), region = 56 }
   0xe   : > { %v370_v0 = vld [vmem:[%s2252_s1] sm:$0xf]  ;;  %vm415_vm0 = vcmask 1043456   ;;  %p341_p5 = scmp.lt.s32.totalorder %s1499_s10, 1  ;;  %v701_v2 = vld [vmem:[%s2258_s7 + $0x8] sm:$0xff]  ;;  %v1513_v3 = vmov 0   ;;  %v556_v49 = vlaneseq }
   0xf   : > { %1391 = vmatprep.subr.msk.mxu0 %vm415_vm0, %v370_v0  ;;  %v700_v1 = vld [vmem:[%s2258_s7] sm:$0xff]  ;;  %1471 = vset.pattern.permute.xlu0 %v1513_v3  ;;  %s1339_s23 = sshll.u32 %s1495_s30, 6  ;;  %v702_v4 = vld [vmem:[%s2258_s7 + $0x10] sm:$0xff]  ;;  %v703_v5 = vld [vmem:[%s2258_s7 + $0x18] sm:$0xff]  ;;  %vm378_vm1 = vcmask 31744   ;;  %p581_p6 = scmp.gt.s32.totalorder %s1495_s30, 0 }
  0x10   : > { %1392 = vmatpush3.msk.msra.mxu0 %vm415_vm0, %v370_v0  ;;  %s2340_s10 = smov (!%p341_p5, %s1499_s10), 1  ;;  %1472 = vset.pattern.permute.xlu1 %v1513_v3  ;;  %v704_v6 = vld [vmem:[%s2258_s7 + $0x20] sm:$0xff]  ;;  %v811_v13 = vld [vmem:[%s2259_s8 + $0x10] sm:$0xff]  ;;  %v705_v14 = vld [vmem:[%s2258_s7 + $0x28] sm:$0xff]  ;;  %v1756_v51 = vshrl.u32 %v556_v49, 7  ;;  %p609_p7 = scmp.lt.s32.totalorder %s1495_s30, 3 }
  0x11   : > { %714 = vperm.xlu0 %1471, %v700_v1   ;;  %s1429_s22 = smul.u32 288, %s2340_s10  ;;  %719 = vperm.xlu1 %1472, %v701_v2   ;;  %v809_v10 = vld [vmem:[%s2259_s8] sm:$0xff]  ;;  %v810_v17 = vld [vmem:[%s2259_s8 + $0x8] sm:$0xff]  ;;  %v812_v18 = vld [vmem:[%s2259_s8 + $0x18] sm:$0xff]  ;;  %vm1098_vm6 = vcmask 195584   ;;  %s1336_s19 = sshll.u32 %s1495_s30, 3 }
  0x12   : > { %v813_v21 = vld [vmem:[%s2259_s8 + $0x20] sm:$0xff]  ;;  %v814_v22 = vld [vmem:[%s2259_s8 + $0x28] sm:$0xff]  ;;  %v706_v25 = vld [vmem:[%s2258_s7 + $0x30] sm:$0xff]  ;;  %v907_v56 = vsub.s32 1, %v1756_v51  ;;  %v959_v57 = vsub.s32 4, %v1756_v51  ;;  %v895_v60 = vsub.s32 0, %v1756_v51 }
  0x13   : > { %s345_s16 = scalar_lea.vmem %s2251_s0, %s1429_s22  ;;  %v707_v26 = vld [vmem:[%s2258_s7 + $0x38] sm:$0xff]  ;;  %v815_v28 = vld [vmem:[%s2259_s8 + $0x30] sm:$0xff]  ;;  %v708_v30 = vld [vmem:[%s2258_s7 + $0x40] sm:$0xff]  ;;  %v1011_v61 = vsub.s32 7, %v1756_v51  ;;  %v947_v63 = vsub.s32 3, %v1756_v51  ;;  %v979_v2 = vsub.s32 5, %v1756_v51 }
  0x14   : > { %s1618_s17 = scalar_lea.vmem %s345_s16, %s1339_s23  ;;  %v816_v29 = vld [vmem:[%s2259_s8 + $0x38] sm:$0xff]  ;;  %v709_v31 = vld [vmem:[%s2258_s7 + $0x48] sm:$0xff]  ;;  %v817_v32 = vld [vmem:[%s2259_s8 + $0x40] sm:$0xff]  ;;  %v999_v3 = vsub.s32 6, %v1756_v51  ;;  %vm687_vm3 = vcmp.lt.s32.totalorder %v1756_v51, 1  ;;  %vm796_vm4 = vcmp.lt.s32.totalorder %v1756_v51, 7 }
  0x15   : > { %724 = vperm.xlu0 %1471, %v702_v4   ;;  %v358_v7 = vld [vmem:[%s1618_s17] sm:$0xff]  ;;  %v359_v8 = vld [vmem:[%s1618_s17 + $0x8] sm:$0xff]  ;;  %v1626_v9 = vld [vmem:[%s1618_s17 + $0x10] sm:$0xff]  ;;  %729 = vperm.xlu1 %1472, %v703_v5   ;;  %s582_s23 = scalar_select %p581_p6, 1, 0  ;;  %v927_v4 = vsub.s32 2, %v1756_v51 }
  0x16   : > { %2272 = vst [vmem:[#allocation2_spill] sm:$0xff] %v1626_v9  ;;  %1393 = vmatprep.mubr.msk.f32.mxu0 %vm378_vm1, %v358_v7  ;;  %v1636_v11 = vld [vmem:[%s1618_s17 + $0x18] sm:$0xff]  ;;  %v1639_v12 = vld [vmem:[%s1618_s17 + $0x20] sm:$0xff]  ;;  %v1652_v15 = vld [vmem:[%s1618_s17 + $0x28] sm:$0xff]  ;;  %s1785_s28 = scalar_select %p609_p7, 1, 0 }
  0x17   : > { %1394 = vmatmul.mubr.msk.f32.vlgmr.msra.gmra.mxu0 %vm378_vm1, %v359_v8  ;;  %2273 = vst [vmem:[#allocation3_spill] sm:$0xff] %v1636_v11  ;;  %2274 = vst [vmem:[#allocation4_spill] sm:$0xff] %v1639_v12  ;;  %v1655_v16 = vld [vmem:[%s1618_s17 + $0x30] sm:$0xff]  ;;  %v1668_v19 = vld [vmem:[%s1618_s17 + $0x38] sm:$0xff]  ;;  %v583_v55 = vstv %s582_s23  ;;  %p349_p8 = scmp.lt.s32.totalorder %s1336_s19, 31  ;;  %s1337_s20 = sshll.u32 %s2340_s10, 5 }
  0x18   : > { %1396 = vmatprep.mubr.msk.f32.mxu0 %vm378_vm1, %v1626_v9  ;;  %2275 = vst [vmem:[#allocation5_spill] sm:$0xff] %v1652_v15  ;;  %2276 = vst [vmem:[#allocation6_spill] sm:$0xff] %v1655_v16  ;;  %v1671_v20 = vld [vmem:[%s1618_s17 + $0x40] sm:$0xff]  ;;  %v1684_v23 = vld [vmem:[%s1618_s17 + $0x48] sm:$0xff]  ;;  %vm1777_vm2 = vcmp.eq.s32.totalorder %v583_v55, 1 }
  0x19   : > { %734 = vperm.xlu0 %1471, %v704_v6   ;;  %823 = vperm.xlu1 %1472, %v809_v10   ;;  %2277 = vst [vmem:[#allocation7_spill] sm:$0xff] %v1668_v19  ;;  %2278 = vst [vmem:[#allocation8_spill] sm:$0xff] %v1671_v20  ;;  %v368_v24 = vld [vmem:[%s1618_s17 + $0x50] sm:$0xff]  ;;  %v369_v27 = vld [vmem:[%s1618_s17 + $0x58] sm:$0xff]  ;;  %s2342_s19 = smov (!%p349_p8, %s1336_s19), 31 }
  0x1a   : > { %2279 = vst [vmem:[#allocation9_spill] sm:$0xff] %v1684_v23  ;;  %v818_v33 = vld [vmem:[%s2259_s8 + $0x48] sm:$0xff]  ;;  %v710_v34 = vld [vmem:[%s2258_s7 + $0x50] sm:$0xff]  ;;  %v711_v35 = vld [vmem:[%s2258_s7 + $0x58] sm:$0xff]  ;;  %s352_s21 = sadd.s32 %s1337_s20, %s2342_s19 }
  0x1b   : > { %1397 = vmatmul.mubr.msk.f32.gmra.mxu0 %vm378_vm1, %v1636_v11  ;;  %v819_v36 = vld [vmem:[%s2259_s8 + $0x50] sm:$0xff]  ;;  %v820_v37 = vld [vmem:[%s2259_s8 + $0x58] sm:$0xff]  ;;  %v1089_v39 = vld [vmem:[%s2256_s5 + $0x8] sm:$0xff]  ;;  %s1338_s24 = sshll.u32 %s352_s21, 3 }
  0x1c   : > { %1399 = vmatprep.mubr.msk.f32.mxu0 %vm378_vm1, %v1639_v12  ;;  %v1090_v38 = vld [vmem:[%s2256_s5 + $0x10] sm:$0xff]  ;;  %v1088_v40 = vld [vmem:[%s2256_s5] sm:$0xff]  ;;  %s354_s27 = scalar_lea.vmem %s2260_s9, %s1338_s24 }
  0x1d   : > { %833 = vperm.xlu0 %1471, %v811_v13   ;;  %739 = vperm.xlu1 %1472, %v705_v14   ;;  %v1763_v53 = vld [vmem:[%s2253_s2] ss:$0 sm:$0xff] }
  0x1e   : > { %1411 = vmatprep.subr.mxu1 %v1090_v38  ;;  %v673_v59 = vld [vmem:[%s2254_s3] sm:$0xff] }
  0x1f   : > { %1400 = vmatmul.mubr.msk.f32.gmra.mxu0 %vm378_vm1, %v1652_v15  ;;  %1412 = vmatpush3.msra.mxu1 %v1090_v38  ;;  %v1790_v7 = vrot.slane %v673_v59, %v907_v56  ;;  %v1793_v10 = vrot.slane %v673_v59, %v959_v57  ;;  %v1797_v13 = vrot.slane %v673_v59, %v895_v60  ;;  %v2290_v15 = vstv %s1785_s28 }
  0x20   : > { %1402 = vmatprep.mubr.msk.f32.mxu0 %vm378_vm1, %v1655_v16  ;;  %1413 = vmatprep.subr.mxu1 %v1089_v39  ;;  %vm1943_vm5 = vcmp.eq.s32.totalorder %v2290_v15, 1 }
  0x21   : > { %828 = vperm.xlu0 %1471, %v810_v17   ;;  %838 = vperm.xlu1 %1472, %v812_v18   ;;  %v1799_v17 = vrot.slane %v673_v59, %v1011_v61 }
  0x22   : > { %1414 = vmatpush3.msra.mxu1 %v1089_v39 }
  0x23   : > { %1403 = vmatmul.mubr.msk.f32.gmra.mxu0 %vm378_vm1, %v1668_v19  ;;  %1415 = vmatprep.subr.mxu1 %v1088_v40 }
  0x24   : > { %1405 = vmatprep.mubr.msk.f32.mxu0 %vm378_vm1, %v1671_v20  ;;  %1416 = vmatpush3.msra.mxu1 %v1088_v40 }
  0x25   : > { %843 = vperm.xlu0 %1471, %v813_v21   ;;  %848 = vperm.xlu1 %1472, %v814_v22  }
  0x27   : > { %1406 = vmatmul.mubr.msk.f32.gmra.mxu0 %vm378_vm1, %v1684_v23 }
  0x28   : > { %1408 = vmatprep.mubr.msk.f32.mxu0 %vm378_vm1, %v368_v24 }
  0x29   : > { %744 = vperm.xlu0 %1471, %v706_v25   ;;  %749 = vperm.xlu1 %1472, %v707_v26   ;;  %v1806_v25 = vrot.slane %v673_v59, %v947_v63 }
  0x2b   : > { %1409 = vmatmul.mubr.msk.f32.gmra.mxu0 %vm378_vm1, %v369_v27  ;;  %v1808_v27 = vrot.slane %v673_v59, %v979_v2 }
  0x2d   : > { %853 = vperm.xlu0 %1471, %v815_v28   ;;  %858 = vperm.xlu1 %1472, %v816_v29   ;;  %v1810_v28 = vrot.slane %v673_v59, %v999_v3 }
  0x31   : > { %754 = vperm.xlu0 %1471, %v708_v30   ;;  %759 = vperm.xlu1 %1472, %v709_v31   ;;  %v1813_v30 = vrot.slane %v673_v59, %v927_v4 }
  0x35   : > { %863 = vperm.xlu0 %1471, %v817_v32   ;;  %868 = vperm.xlu1 %1472, %v818_v33  }
  0x39   : > { %764 = vperm.xlu0 %1471, %v710_v34   ;;  %769 = vperm.xlu1 %1472, %v711_v35  }
  0x3d   : > { %873 = vperm.xlu0 %1471, %v819_v36   ;;  %878 = vperm.xlu1 %1472, %v820_v37  }
  0x8c   : > { %v1737_v41 = vpop.permute.xlu1 %719  ;;  %v1739_v42 = vpop.permute.xlu0 %714 }
  0x90   : > { %v1741_v43 = vpop.permute.xlu1 %729  ;;  %v1743_v44 = vpop.permute.xlu0 %724 }
  0x94   : > { %v1745_v45 = vpop.permute.xlu1 %823  ;;  %v1747_v46 = vpop.permute.xlu0 %734 }
  0x98   : > { %v1749_v47 = vpop.permute.xlu1 %739  ;;  %v1751_v48 = vpop.permute.xlu0 %833 }
  0x9c   : > { %v1754_v50 = vpop.permute.xlu1 %838  ;;  %v1758_v52 = vpop.permute.xlu0 %828 }
  0xa0   : > { %v1766_v54 = vpop.permute.xlu1 %848  ;;  %v1788_v5 = vpop.permute.xlu0 %843 }
  0xa4   : > { %v1801_v18 = vpop.permute.xlu1 %749  ;;  %v1825_v40 = vpop.permute.xlu0 %744 }
  0xa8   : > { %v1846_v63 = vpop.permute.xlu1 %858 }
  0xd7   : > { %v1395_v58 = vpop.f32.mrf.mxu0 }
  0xd8   : > { %v491_v62 = vadd.f32 %v1395_v58, %v1763_v53 }
  0xd9   : > { %v485_v1 = vpop.f32.mrf.mxu0 }
  0xda   : > { %v545_v6 = vmax.f32 %v491_v62, 0.0  ;;  %v486_v8 = vadd.f32 %v1763_v53, %v485_v1 }
  0xdb   : > { %v1398_v14 = vpop.f32.mrf.mxu0 }
  0xdc   : > { %v662_v21 = vsel %vm1777_vm2, %v545_v6, 0.0  ;;  %v544_v22 = vmax.f32 %v486_v8, 0.0  ;;  %v501_v24 = vadd.f32 %v1398_v14, %v1763_v53 }
  0xdd   : > { %v495_v26 = vpop.f32.mrf.mxu0  ;;  %v676_v31 = vrot.slane %v662_v21, 7  ;;  %v785_v35 = vrot.slane %v662_v21, 1  ;;  %v910_v36 = vmul.f32 %v1790_v7, %v662_v21 }
  0xde   : > { %v1817_v32 = vsel %vm1777_vm2, %v544_v22, 0.0  ;;  %v1819_v33 = vmax.f32 %v501_v24, 0.0  ;;  %v496_v34 = vadd.f32 %v1763_v53, %v495_v26 }
  0xdf   : > { %v2262_v37 = vrot.slane %v1817_v32, 7  ;;  %v2261_v38 = vrot.slane %v1817_v32, 1  ;;  %v1401_v39 = vpop.f32.mrf.mxu0  ;;  %v1829_v49 = vmul.f32 %v1790_v7, %v1817_v32 }
  0xe0   : > { %v678_v55 = vrot.slane %v1819_v33, 7  ;;  %v787_v56 = vrot.slane %v1819_v33, 1  ;;  %v1835_v57 = vmul.f32 %v1790_v7, %v1819_v33  ;;  %v546_v60 = vmax.f32 %v496_v34, 0.0 }
  0xe1   : > { %v698_v58 = vsel %vm687_vm3, %v2262_v37, %v676_v31  ;;  %v807_v59 = vsel %vm796_vm4, %v2261_v38, %v785_v35  ;;  %v511_v61 = vadd.f32 %v1401_v39, %v1763_v53  ;;  %v505_v62 = vpop.f32.mrf.mxu0  ;;  %v1854_v2 = vmul.f32 %v1793_v10, %v1819_v33 }
  0xe2   : > { %2282 = vst [vmem:[#allocation10_spill] sm:$0xff] %v1835_v57  ;;  %v773_v0 = vmul.f32 %v1737_v41, %v698_v58  ;;  %v1850_v1 = vmul.f32 %v1745_v45, %v807_v59  ;;  %v506_v3 = vadd.f32 %v1763_v53, %v505_v62  ;;  %v677_v4 = vrot.slane %v546_v60, 7  ;;  %v1877_v59 = vpop.permute.xlu0 %853 }
  0xe3   : > { %v786_v6 = vrot.slane %v546_v60, 1  ;;  %v911_v8 = vmul.f32 %v1790_v7, %v546_v60  ;;  %v1859_v14 = vmul.f32 %v1793_v10, %v546_v60  ;;  %v1404_v21 = vpop.f32.mrf.mxu0  ;;  %v1862_v41 = vmax.f32 %v511_v61, 0.0 }
  0xe4   : > { %v898_v22 = vmul.f32 %v1797_v13, %v773_v0  ;;  %v1864_v45 = vmax.f32 %v506_v3, 0.0  ;;  %v521_v24 = vadd.f32 %v1404_v21, %v1763_v53  ;;  %v696_v26 = vsel %vm687_vm3, %v677_v4, %v678_v55 }
  0xe5   : > { %v697_v33 = vsel %vm687_vm3, %v676_v31, %v677_v4  ;;  %v806_v34 = vsel %vm796_vm4, %v785_v35, %v786_v6  ;;  %v515_v39 = vpop.f32.mrf.mxu0  ;;  %v1875_v58 = vsel %vm796_vm4, %v786_v6, %v787_v56  ;;  %v775_v62 = vmul.f32 %v1741_v43, %v696_v26 }
  0xe6   : > { %v1879_v60 = vadd.f32 %v910_v36, %v898_v22  ;;  %v1882_v61 = vmul.f32 %v1743_v44, %v697_v33  ;;  %v1886_v0 = vmul.f32 %v1758_v52, %v806_v34  ;;  %v680_v31 = vrot.slane %v1862_v41, 7  ;;  %v760_v44 = vpop.permute.xlu1 %759 }
  0xe7   : > { %v1892_v3 = vmul.f32 %v1790_v7, %v1862_v41  ;;  %v1896_v36 = vmul.f32 %v1793_v10, %v1862_v41  ;;  %v1407_v4 = vpop.f32.mrf.mxu0  ;;  %v1901_v52 = vmul.f32 %v1797_v13, %v775_v62  ;;  %v1904_v6 = vmul.f32 %v1806_v25, %v775_v62 }
  0xe8   : > { %v899_v43 = vmul.f32 %v1797_v13, %v1882_v61  ;;  %v1908_v21 = vmul.f32 %v1799_v17, %v1862_v41  ;;  %v679_v22 = vrot.slane %v1864_v45, 7  ;;  %v1914_v33 = vmul.f32 %v1790_v7, %v1864_v45 }
  0xe9   : > { %2283 = vst [vmem:[#allocation11_spill] sm:$0xff] %v1892_v3  ;;  %2284 = vst [vmem:[#allocation12_spill] sm:$0xff] %v1896_v36  ;;  %v1918_v34 = vmul.f32 %v1793_v10, %v1864_v45  ;;  %v525_v38 = vpop.f32.mrf.mxu0  ;;  %v551_v37 = vmax.f32 %v521_v24, 0.0  ;;  %v516_v35 = vadd.f32 %v1763_v53, %v515_v39  ;;  %v531_v29 = vadd.f32 %v1407_v4, %v1763_v53  ;;  %v755_v24 = vpop.permute.xlu0 %754 }
  0xea   : > { %2285 = vst [vmem:[#allocation13_spill] sm:$0xff] %v1901_v52  ;;  %2286 = vst [vmem:[#allocation14_spill] sm:$0xff] %v1914_v33  ;;  %v1920_v62 = vadd.f32 %v911_v8, %v899_v43  ;;  %v694_v26 = vsel %vm687_vm3, %v679_v22, %v680_v31  ;;  %v2288_v20 = vrot.slane %v1864_v45, 1  ;;  %v526_v16 = vadd.f32 %v1763_v53, %v525_v38 }
  0xeb   : > { %2287 = vst [vmem:[#allocation15_spill] sm:$0xff] %v1918_v34  ;;  %v1410_v19 = vpop.f32.mrf.mxu0  ;;  %v695_v8 = vsel %vm687_vm3, %v678_v55, %v679_v22  ;;  %v1936_v39 = vmul.f32 %v1749_v47, %v694_v26  ;;  %v682_v4 = vrot.slane %v551_v37, 7  ;;  %v791_v43 = vrot.slane %v551_v37, 1  ;;  %v1955_v22 = vpop.permute.xlu1 %868 }
  0xec   : > { %v1930_v23 = vsel %vm796_vm4, %v787_v56, %v2288_v20  ;;  %v1939_v12 = vmul.f32 %v1790_v7, %v551_v37  ;;  %v1948_v20 = vmul.f32 %v1793_v10, %v551_v37  ;;  %v1951_v38 = vmul.f32 %v1799_v17, %v551_v37 }
  0xed   : > { %v550_v55 = vmax.f32 %v516_v35, 0.0  ;;  %v1953_v56 = vmax.f32 %v531_v29, 0.0  ;;  %v535_v47 = vpop.f32.mrf.mxu0  ;;  %v552_v26 = vmax.f32 %v526_v16, 0.0  ;;  %v541_v11 = vadd.f32 %v1410_v19, %v1763_v53 }
  0xee   : > { %2289 = vst [vmem:[#allocation16_spill] sm:$0xff] %v1939_v12  ;;  %2293 = vst [vmem:[#allocation17_spill] sm:$0xff] %v1948_v20  ;;  %v536_v15 = vadd.f32 %v1763_v53, %v535_v47  ;;  %v1960_v12 = vmul.f32 %v1747_v46, %v695_v8  ;;  %v2297_v8 = vrot.slane %v1862_v41, 1  ;;  %v864_v47 = vpop.permute.xlu0 %863 }
  0xef   : > { %2294 = vst [vmem:[#allocation18_spill] sm:$0xff] %v1951_v38  ;;  %v681_v3 = vrot.slane %v550_v55, 7  ;;  %v790_v33 = vrot.slane %v550_v55, 1  ;;  %v915_v20 = vmul.f32 %v1790_v7, %v550_v55  ;;  %v965_v37 = vmul.f32 %v1793_v10, %v550_v55 }
  0xf0   : > { %v1965_v29 = vmul.f32 %v1799_v17, %v550_v55  ;;  %v1971_v19 = vmul.f32 %v1793_v10, %v1953_v56  ;;  %v967_v38 = vmul.f32 %v1793_v10, %v552_v26  ;;  %v1017_v36 = vmul.f32 %v1799_v17, %v552_v26 }
  0xf1   : > { %v692_v46 = vsel %vm687_vm3, %v681_v3, %v682_v4  ;;  %v693_v53 = vsel %vm687_vm3, %v680_v31, %v681_v3  ;;  %v1979_v7 = vsel %vm796_vm4, %v790_v33, %v791_v43  ;;  %v1985_v55 = vsel %vm796_vm4, %v2297_v8, %v790_v33  ;;  %v770_v33 = vpop.permute.xlu1 %769 }
  0xf2   : > { %2295 = vst [vmem:[#allocation19_spill] sm:$0xff] %v1965_v29  ;;  %2296 = vst [vmem:[#allocation20_spill] sm:$0xff] %v1971_v19  ;;  %v1988_v16 = vmul.f32 %v1825_v40, %v693_v53  ;;  %v1991_v35 = vmul.f32 %v1801_v18, %v692_v46  ;;  %v1995_v31 = vmul.f32 %v1799_v17, %v1953_v56  ;;  %v683_v3 = vrot.slane %v552_v26, 7 }
  0xf3   : > { %v792_v19 = vrot.slane %v552_v26, 1  ;;  %v555_v29 = vmax.f32 %v541_v11, 0.0  ;;  %v2300_v18 = vrot.slane %v1953_v56, 7  ;;  %v2301_v11 = vrot.slane %v1953_v56, 1 }
  0xf4   : > { %2298 = vst [vmem:[#allocation21_spill] sm:$0xff] %v1991_v35  ;;  %2299 = vst [vmem:[#allocation22_spill] sm:$0xff] %v1995_v31  ;;  %v903_v8 = vmul.f32 %v1797_v13, %v1988_v16  ;;  %v953_v40 = vmul.f32 %v1806_v25, %v1988_v16  ;;  %v691_v53 = vsel %vm687_vm3, %v682_v4, %v683_v3 }
  0xf5   : > { %v690_v46 = vsel %vm687_vm3, %v683_v3, %v2300_v18  ;;  %v780_v31 = vmul.f32 %v755_v24, %v691_v53  ;;  %v799_v26 = vsel %vm796_vm4, %v792_v19, %v2301_v11  ;;  %v800_v35 = vsel %vm796_vm4, %v791_v43, %v792_v19 }
  0xf6   : > { %v2009_v10 = vmul.f32 %v760_v44, %v690_v46  ;;  %v2017_v34 = vadd.f32 %v915_v20, %v903_v8  ;;  %v2019_v57 = vadd.f32 %v965_v37, %v953_v40  ;;  %v2022_v18 = vmul.f32 %v1846_v63, %v800_v35  ;;  %v765_v20 = vpop.permute.xlu0 %764  ;;  %v879_v46 = vpop.permute.xlu1 %878 }
  0xf7   : > { %v2024_v52 = vmul.f32 %v864_v47, %v799_v26  ;;  %v955_v44 = vmul.f32 %v1806_v25, %v780_v31  ;;  %v1005_v4 = vmul.f32 %v1810_v28, %v780_v31  ;;  %v672_v43 = vsel %vm1943_vm5, %v555_v29, 0.0 }
  0xf8   : > { %v2029_v24 = vmul.f32 %v1806_v25, %v2009_v10  ;;  %v686_v19 = vrot.slane %v672_v43, 7  ;;  %v795_v63 = vrot.slane %v672_v43, 1  ;;  %v2037_v35 = vmul.f32 %v1799_v17, %v672_v43 }
  0xf9   : > { %v987_v37 = vmul.f32 %v1808_v27, %v2024_v52  ;;  %v975_v47 = vadd.f32 %v967_v38, %v955_v44  ;;  %v2039_v3 = vadd.f32 %v1017_v36, %v1005_v4  ;;  %v554_v8 = vmax.f32 %v536_v15, 0.0 }
  0xfa   : > { %v2302_v40 = vrot.slane %v1862_v41, 1  ;;  %v2303_v31 = vrot.slane %v1864_v45, 1  ;;  %v2304_v53 = vrot.slane %v1817_v32, 7  ;;  %v2305_v26 = vrot.slane %v1817_v32, 1  ;;  %v2068_v32 = vld [vmem:[%s2254_s3 + $0x8] ss:$0 sm:$0xff] }
  0xfb   : > { %v883_v38 = vmul.f32 %v1751_v48, %v1875_v58  ;;  %v2060_v15 = vadd.f32 %v987_v37, %v975_v47  ;;  %v671_v43 = vsel %vm1943_vm5, %v554_v8, 0.0  ;;  %v949_v37 = vmul.f32 %v1806_v25, %v1882_v61  ;;  %v874_v47 = vpop.permute.xlu0 %873 }
  0xfc   : > { %v803_v29 = vsel %vm796_vm4, %v2303_v31, %v2302_v40  ;;  %v699_v11 = vsel %vm687_vm3, %v686_v19, %v2304_v53  ;;  %v808_v36 = vsel %vm796_vm4, %v795_v63, %v2305_v26  ;;  %v685_v40 = vrot.slane %v671_v43, 7 }
  0xfd   : > { %v2058_v41 = vmul.f32 %v1788_v5, %v803_v29  ;;  %v772_v44 = vmul.f32 %v1739_v42, %v699_v11  ;;  %v892_v4 = vmul.f32 %v879_v46, %v808_v36  ;;  %v794_v31 = vrot.slane %v671_v43, 1 }
  0xfe   : > { %v1019_v48 = vmul.f32 %v1799_v17, %v671_v43  ;;  %v929_v5 = vmul.f32 %v1813_v30, %v1850_v1  ;;  %v931_v9 = vmul.f32 %v1813_v30, %v883_v38  ;;  %v688_v8 = vsel %vm687_vm3, %v685_v40, %v686_v19 }
  0xff   : > { %v2074_v58 = vmul.f32 %v2068_v32, %v892_v4  ;;  %v897_v42 = vmul.f32 %v1797_v13, %v772_v44  ;;  %v2306_v29 = vrot.slane %v1953_v56, 7  ;;  %v797_v1 = vsel %vm796_vm4, %v794_v31, %v795_v63 }
 0x100   : > { %v2307_v53 = vrot.slane %v1953_v56, 1  ;;  %v783_v36 = vmul.f32 %v770_v33, %v688_v8  ;;  %v891_v44 = vmul.f32 %v874_v47, %v797_v1  ;;  %v969_v4 = vadd.f32 %v1859_v14, %v949_v37 }
 0x101   : > { %v689_v46 = vsel %vm687_vm3, %v2306_v29, %v685_v40  ;;  %v917_v19 = vadd.f32 %v1829_v49, %v897_v42  ;;  %v981_v43 = vmul.f32 %v1808_v27, %v883_v38  ;;  %v1001_v40 = vmul.f32 %v1810_v28, %v1960_v12 }
 0x102   : > { %v798_v11 = vsel %vm796_vm4, %v2307_v53, %v794_v31  ;;  %v782_v26 = vmul.f32 %v765_v20, %v689_v46  ;;  %v2103_v56 = vmul.f32 %v1810_v28, %v783_v36  ;;  %v1039_v49 = vmul.f32 %v2068_v32, %v891_v44  ;;  %v2309_v36 = vld [vmem:[#allocation10_spill] sm:$0xff] }
 0x103   : > { %v890_v61 = vmul.f32 %v1955_v22, %v798_v11  ;;  %v937_v33 = vadd.f32 %v929_v5, %v917_v19  ;;  %v989_v14 = vadd.f32 %v981_v43, %v969_v4  ;;  %v1013_v20 = vmul.f32 %v1799_v17, %v1864_v45  ;;  %v2311_v4 = vld [vmem:[#allocation19_spill] sm:$0xff] }
 0x104   : > { %v1007_v51 = vmul.f32 %v1810_v28, %v782_v26  ;;  %v1033_v31 = vmul.f32 %v2068_v32, %v2058_v41  ;;  %v884_v42 = vmul.f32 %v1754_v50, %v1930_v23  ;;  %v886_v37 = vmul.f32 %v1766_v54, %v1985_v55  ;;  %v2308_v26 = vld [vmem:[#allocation13_spill] sm:$0xff] }
 0x105   : > { %v2099_v63 = vmul.f32 %v1808_v27, %v890_v61  ;;  %v2106_v22 = vmul.f32 %v2068_v32, %v890_v61  ;;  %v1021_v47 = vadd.f32 %v1013_v20, %v1001_v40  ;;  %v1049_v8 = vadd.f32 %v989_v14, %v937_v33  ;;  %v2312_v14 = vld [vmem:[#allocation21_spill] sm:$0xff] }
 0x106   : > { %v1027_v38 = vadd.f32 %v1019_v48, %v1007_v51  ;;  %v930_v5 = vmul.f32 %v1813_v30, %v1886_v0  ;;  %v970_v29 = vadd.f32 %v1854_v2, %v1904_v6  ;;  %v982_v45 = vmul.f32 %v1808_v27, %v884_v42 }
 0x107   : > { %v1002_v48 = vmul.f32 %v1810_v28, %v1936_v39  ;;  %v1034_v23 = vmul.f32 %v2068_v32, %v886_v37  ;;  %v1041_v50 = vadd.f32 %v1033_v31, %v1021_v47  ;;  %v887_v55 = vmul.f32 %v1877_v59, %v1979_v7  ;;  %v2313_v47 = vld [vmem:[#allocation12_spill] sm:$0xff] }
 0x108   : > { %v2121_v17 = vadd.f32 %v1039_v49, %v1027_v38  ;;  %v938_v54 = vadd.f32 %v930_v5, %v1879_v60  ;;  %v939_v0 = vadd.f32 %v931_v9, %v1920_v62  ;;  %v990_v46 = vadd.f32 %v982_v45, %v970_v29  ;;  %v2144_v62 = vld [vmem:[%s2255_s4] ss:$0 sm:$0xff]  ;;  %v2310_v9 = vld [vmem:[#allocation15_spill] sm:$0xff] }
 0x109   : > { %v1022_v2 = vadd.f32 %v1908_v21, %v1002_v48  ;;  %v951_v6 = vmul.f32 %v1806_v25, %v1960_v12  ;;  %v983_v1 = vmul.f32 %v1808_v27, %v2058_v41  ;;  %v1057_v53 = vadd.f32 %v1049_v8, %v1041_v50  ;;  %v2314_v45 = vld [vmem:[#allocation18_spill] sm:$0xff] }
 0x10a   : > { %v1003_v11 = vmul.f32 %v1810_v28, %v1988_v16  ;;  %v1035_v60 = vmul.f32 %v2068_v32, %v887_v55  ;;  %v920_v59 = vadd.f32 %v2309_v36, %v2308_v26  ;;  %v1050_v7 = vadd.f32 %v990_v46, %v938_v54 }
 0x10b   : > { %v1042_v21 = vadd.f32 %v1034_v23, %v1022_v2  ;;  %v971_v61 = vadd.f32 %v2310_v9, %v951_v6  ;;  %v932_v44 = vmul.f32 %v1813_v30, %v884_v42  ;;  %v1072_v19 = vadd.f32 %v2144_v62, %v1057_v53 }
 0x10c   : > { %v1023_v16 = vadd.f32 %v2311_v4, %v1003_v11  ;;  %v952_v43 = vmul.f32 %v1806_v25, %v1936_v39  ;;  %v984_v40 = vmul.f32 %v1808_v27, %v886_v37  ;;  %v1004_v20 = vmul.f32 %v1810_v28, %v2312_v14 }
 0x10d   : > { %v1058_v51 = vadd.f32 %v1050_v7, %v1042_v21  ;;  %v991_v49 = vadd.f32 %v983_v1, %v971_v61  ;;  %v940_v33 = vadd.f32 %v932_v44, %v920_v59  ;;  %v1080_v38 = vmax.f32 %v1072_v19, 0.0  ;;  %v2316_v7 = vld [vmem:[#allocation11_spill] sm:$0xff]  ;;  %v2317_v44 = vld [vmem:[#allocation17_spill] sm:$0xff] }
 0x10e   : > { %v1043_v31 = vadd.f32 %v1035_v60, %v1023_v16  ;;  %v972_v8 = vadd.f32 %v2313_v47, %v952_v43  ;;  %v1036_v42 = vmul.f32 %v2068_v32, %v2022_v18  ;;  %v1024_v48 = vadd.f32 %v2314_v45, %v1004_v20  ;;  %v2318_v43 = vld [vmem:[#allocation22_spill] sm:$0xff] }
 0x10f   : > { %v1073_v5 = vadd.f32 %v2144_v62, %v1058_v51  ;;  %v1051_v29 = vadd.f32 %v991_v49, %v939_v0  ;;  %v901_v23 = vmul.f32 %v1797_v13, %v1960_v12  ;;  %1417 = vmatprep.mubr.msk.f32.mxu1 %vm1098_vm6, %v1080_v38  ;;  %v933_v54 = vmul.f32 %v1813_v30, %v2058_v41  ;;  %v2315_v0 = vld [vmem:[#allocation14_spill] sm:$0xff]  ;;  %v2320_v38 = vld [vmem:[#allocation20_spill] sm:$0xff] }
 0x110   : > { %v992_v50 = vadd.f32 %v984_v40, %v972_v8  ;;  %v985_v46 = vmul.f32 %v1808_v27, %v887_v55  ;;  %v1037_v2 = vmul.f32 %v2068_v32, %v2024_v52  ;;  %v1044_v53 = vadd.f32 %v1036_v42, %v1024_v48 }
 0x111   : > { %v1081_v6 = vmax.f32 %v1073_v5, 0.0  ;;  %v1059_v1 = vadd.f32 %v1051_v29, %v1043_v31  ;;  %v921_v11 = vadd.f32 %v2315_v0, %v901_v23  ;;  %v902_v36 = vmul.f32 %v1797_v13, %v1936_v39 }
 0x112   : > { %v1052_v60 = vadd.f32 %v992_v50, %v940_v33  ;;  %v993_v26 = vadd.f32 %v985_v46, %v2019_v57  ;;  %v1045_v12 = vadd.f32 %v1037_v2, %v2039_v3  ;;  %v934_v52 = vmul.f32 %v1813_v30, %v886_v37  ;;  %v2319_v33 = vld [vmem:[#allocation16_spill] sm:$0xff]  ;;  %v2321_v50 = vld [vmem:[#allocation3_spill] sm:$0xff]  ;;  %v2322_v2 = vld [vmem:[#allocation2_spill] sm:$0xff] }
 0x113   : > { %1418 = vmatmul.mubr.msk.f32.vlgmr.msra.gmra.mxu1 %vm1098_vm6, %v1081_v6  ;;  %v1074_v41 = vadd.f32 %v2144_v62, %v1059_v1  ;;  %v941_v59 = vadd.f32 %v933_v54, %v921_v11  ;;  %v954_v32 = vmul.f32 %v1806_v25, %v2312_v14  ;;  %v922_v9 = vadd.f32 %v2316_v7, %v902_v36  ;;  %v2323_v11 = vld [vmem:[#allocation5_spill] sm:$0xff] }
 0x114   : > { %v1060_v21 = vadd.f32 %v1052_v60, %v1044_v53  ;;  %v986_v57 = vmul.f32 %v1808_v27, %v2022_v18  ;;  %v1006_v3 = vmul.f32 %v1810_v28, %v2009_v10  ;;  %v935_v4 = vmul.f32 %v1813_v30, %v887_v55 }
 0x115   : > { %v1082_v39 = vmax.f32 %v1074_v41, 0.0  ;;  %v1053_v61 = vadd.f32 %v993_v26, %v941_v59  ;;  %v974_v19 = vadd.f32 %v2317_v44, %v954_v32  ;;  %v942_v16 = vadd.f32 %v934_v52, %v922_v9  ;;  %v2325_v32 = vld [vmem:[#allocation7_spill] sm:$0xff]  ;;  %v2327_v44 = vld [vmem:[#allocation9_spill] sm:$0xff] }
 0x116   : > { %v1075_v37 = vadd.f32 %v2144_v62, %v1060_v21  ;;  %v1026_v25 = vadd.f32 %v2318_v43, %v1006_v3  ;;  %v904_v40 = vmul.f32 %v1797_v13, %v2312_v14  ;;  %v943_v28 = vadd.f32 %v935_v4, %v2017_v34 }
 0x117   : > { %1420 = vmatprep.mubr.msk.f32.mxu1 %vm1098_vm6, %v1082_v39  ;;  %v1061_v27 = vadd.f32 %v1053_v61, %v1045_v12  ;;  %v994_v51 = vadd.f32 %v986_v57, %v974_v19  ;;  %v936_v10 = vmul.f32 %v1813_v30, %v2022_v18  ;;  %v976_v31 = vadd.f32 %v2320_v38, %v2029_v24  ;;  %v2324_v12 = vld [vmem:[#allocation4_spill] sm:$0xff]  ;;  %v2326_v57 = vld [vmem:[#allocation6_spill] sm:$0xff] }
 0x118   : > { %v1083_v49 = vmax.f32 %v1075_v37, 0.0  ;;  %v1046_v55 = vadd.f32 %v2106_v22, %v1026_v25  ;;  %v924_v20 = vadd.f32 %v2319_v33, %v904_v40  ;;  %v1055_v14 = vadd.f32 %v2060_v15, %v943_v28  ;;  %v2328_v37 = vld [vmem:[#allocation8_spill] sm:$0xff] }
 0x119   : > { %v1076_v47 = vadd.f32 %v2144_v62, %v1061_v27  ;;  %v1054_v13 = vadd.f32 %v994_v51, %v942_v16  ;;  %v1028_v8 = vadd.f32 %v2037_v35, %v2103_v56  ;;  %v996_v30 = vadd.f32 %v2099_v63, %v976_v31 }
 0x11a   : > { %1421 = vmatmul.mubr.msk.f32.gmra.mxu1 %vm1098_vm6, %v1083_v49  ;;  %v944_v34 = vadd.f32 %v936_v10, %v924_v20  ;;  %v1063_v42 = vadd.f32 %v1055_v14, %v2121_v17 }
 0x11b   : > { %v1084_v18 = vmax.f32 %v1076_v47, 0.0  ;;  %v1062_v22 = vadd.f32 %v1054_v13, %v1046_v55  ;;  %v1048_v24 = vadd.f32 %v2074_v58, %v1028_v8  ;;  %v1356_v58 = vld [vmem:[%s2257_s6] ss:$0 sm:$0xff] }
 0x11c   : > { %v1056_v5 = vadd.f32 %v996_v30, %v944_v34  ;;  %v1078_v35 = vadd.f32 %v2144_v62, %v1063_v42 }
 0x11d   : > { %1423 = vmatprep.mubr.msk.f32.mxu1 %vm1098_vm6, %v1084_v18  ;;  %v1077_v15 = vadd.f32 %v2144_v62, %v1062_v22 }
 0x11e   : > { %v1064_v56 = vadd.f32 %v1056_v5, %v1048_v24  ;;  %v1086_v45 = vmax.f32 %v1078_v35, 0.0 }
 0x11f   : > { %v1085_v29 = vmax.f32 %v1077_v15, 0.0 }
 0x120   : > { %v1079_v63 = vadd.f32 %v2144_v62, %v1064_v56 }
 0x121   : > { %1424 = vmatmul.mubr.msk.f32.gmra.mxu1 %vm1098_vm6, %v1085_v29 }
 0x122   : > { %1426 = vmatprep.mubr.msk.f32.mxu1 %vm1098_vm6, %v1086_v45  ;;  %v1087_v17 = vmax.f32 %v1079_v63, 0.0 }
 0x125   : > { %1427 = vmatmul.mubr.msk.f32.gmra.mxu1 %vm1098_vm6, %v1087_v17 }
 0x1d3   : > { %v1419_v48 = vpop.f32.mrf.mxu1 }
 0x1d4   : > { %v1195_v23 = vadd.f32 %v1419_v48, %v1356_v58 }
 0x1d5   : > { %v1189_v62 = vpop.f32.mrf.mxu1 }
 0x1d6   : > { %v1229_v54 = vadd.f32 %v1195_v23, %v2321_v50  ;;  %v1190_v46 = vadd.f32 %v1356_v58, %v1189_v62 }
 0x1d8   : > { %1237 = vst.msk [vmem:[%s354_s27 + $0x8] sm:$0xff] %vm378_vm1, %v1229_v54  ;;  %v1228_v6 = vadd.f32 %v1190_v46, %v2322_v2 }
 0x1da   : > { %1236 = vst.msk [vmem:[%s354_s27] sm:$0xff] %vm378_vm1, %v1228_v6  ;;  %v1422_v1 = vpop.f32.mrf.mxu1 }
 0x1db   : > { %v1205_v53 = vadd.f32 %v1422_v1, %v1356_v58 }
 0x1dc   : > { %v1199_v0 = vpop.f32.mrf.mxu1 }
 0x1dd   : > { %v1231_v60 = vadd.f32 %v1205_v53, %v2323_v11  ;;  %v1200_v26 = vadd.f32 %v1356_v58, %v1199_v0 }
 0x1df   : > { %1239 = vst.msk [vmem:[%s354_s27 + $0x18] sm:$0xff] %vm378_vm1, %v1231_v60  ;;  %v1230_v36 = vadd.f32 %v1200_v26, %v2324_v12 }
 0x1e1   : > { %1238 = vst.msk [vmem:[%s354_s27 + $0x10] sm:$0xff] %vm378_vm1, %v1230_v36  ;;  %v1425_v41 = vpop.f32.mrf.mxu1 }
 0x1e2   : > { %v1215_v59 = vadd.f32 %v1425_v41, %v1356_v58 }
 0x1e3   : > { %v1209_v52 = vpop.f32.mrf.mxu1 }
 0x1e4   : > { %v1233_v21 = vadd.f32 %v1215_v59, %v2325_v32  ;;  %v1210_v7 = vadd.f32 %v1356_v58, %v1209_v52 }
 0x1e5   : > { %v1428_v9 = vpop.f32.mrf.mxu1 }
 0x1e6   : > { %1241 = vst.msk [vmem:[%s354_s27 + $0x28] sm:$0xff] %vm378_vm1, %v1233_v21  ;;  %v1232_v3 = vadd.f32 %v1210_v7, %v2326_v57  ;;  %v1225_v39 = vadd.f32 %v1428_v9, %v1356_v58 }
 0x1e7   : > { %v1219_v61 = vpop.f32.mrf.mxu1 }
 0x1e8   : > { %1240 = vst.msk [vmem:[%s354_s27 + $0x20] sm:$0xff] %vm378_vm1, %v1232_v3  ;;  %v1235_v19 = vadd.f32 %v1225_v39, %v2327_v44  ;;  %v1220_v4 = vadd.f32 %v1356_v58, %v1219_v61 }
 0x1ea   : > { %1243 = vst.msk [vmem:[%s354_s27 + $0x38] sm:$0xff] %vm378_vm1, %v1235_v19  ;;  %v1234_v16 = vadd.f32 %v1220_v4, %v2328_v37 }
 0x1ec   : > { %1242 = vst.msk [vmem:[%s354_s27 + $0x30] sm:$0xff] %vm378_vm1, %v1234_v16 }
 0x1ed PF: > { %s19_s13 = sadd.s32 1, %s1511_s13   ;;  %s2329_s30 = smov %s1503_s11 }
 0x1ee   : > { %p16_p9 = scmp.ge.s32.totalorder %s19_s13, 10   ;;  %s2330_s10 = smov %s1507_s12 }
 0x1ef   : > { %s2331_s11 = smov %s2334_s14  ;;  %s2332_s12 = smov %s2338_s15 }
 0x1f0   :  { %18 = sbr.rel (!%p16_p9) target bundleno = 3 (0x3), region = 87 }

</bundles_post_ra>
